<compile_context>
chip_gen: v7x
topology: tpu7x:2x2x1
jax: 0.10.0
libtpu: 0.0.40
codegen_flags: <defaults>
</compile_context>

<pallas_src>
import functools

import jax
import jax.numpy as jnp
from jax.experimental import pallas as pl
from jax.experimental.pallas import tpu as pltpu


def _round_up(n: int, m: int) -> int:
    return ((n + m - 1) // m) * m


def dqn_kernel(x_ref, w1_ref, b1_ref, w2_ref, b2_ref, o_ref):
    # Cast activations to bf16 in VMEM (keeps the HBM read of x at its natural
    # width; the cast is a cheap VPU op on a VMEM-resident tile).
    x = x_ref[...].astype(jnp.bfloat16)
    # First linear on the MXU: bf16 operands, f32 accumulation.
    h = jnp.dot(x, w1_ref[...], preferred_element_type=jnp.float32)
    # Bias + ReLU epilogue in f32 (v5e has no bf16 VPU; keep the VALU path f32).
    h = jnp.maximum(h + b1_ref[...], 0.0)
    # Second linear: bf16 operands again, f32 accumulation, narrow n_out.
    out = jnp.dot(h.astype(jnp.bfloat16), w2_ref[...],
                  preferred_element_type=jnp.float32)
    # Store only the real n_out columns (no 128-lane padding on the write).
    o_ref[...] = (out + b2_ref[...]).astype(o_ref.dtype)


def prepare_dqn_params(w1, b1, w2, b2):
    """Pad / cast parameters ONCE (outside the per-step hot path).

    w1: [n_in, n_hidden], b1: [n_hidden] or [1, n_hidden],
    w2: [n_hidden, n_out], b2: [n_out] or [1, n_out].
    Only the hidden dim is padded (to a lane-dense multiple of 128); the
    contraction dim of the first matmul (n_in) and the output dim (n_out) are
    left at their natural sizes to minimize HBM traffic.
    """
    n_in, n_hidden = w1.shape
    n_out = w2.shape[1]
    H = _round_up(n_hidden, 128)

    w1_p = jnp.zeros((n_in, H), jnp.bfloat16).at[:, :n_hidden].set(
        w1.astype(jnp.bfloat16))
    b1_p = jnp.zeros((1, H), jnp.float32).at[:, :n_hidden].set(
        jnp.asarray(b1, jnp.float32).reshape(1, n_hidden))
    w2_p = jnp.zeros((H, n_out), jnp.bfloat16).at[:n_hidden, :].set(
        w2.astype(jnp.bfloat16))
    b2_p = jnp.asarray(b2, jnp.float32).reshape(1, n_out)
    return w1_p, b1_p, w2_p, b2_p


@functools.partial(jax.jit, static_argnames=("block_b",))
def dqn_forward(x, params, *, block_b: int = 512):
    """x: [B, n_in]; params: output of prepare_dqn_params. Returns [B, n_out] f32."""
    w1_p, b1_p, w2_p, b2_p = params
    B, n_in = x.shape
    assert w1_p.shape[0] == n_in, "x feature dim must match prepared w1"
    H = w1_p.shape[1]
    n_out = w2_p.shape[1]

    # Batch tiling: large tiles amortize the ~0.35us per-grid-step overhead;
    # clamp to ~B for small batches so we don't compute/write padded garbage
    # rows, and prefer >= 2 tiles when the batch is large enough so v7x's two
    # TensorCores both get work on the "parallel" batch axis.
    TB = min(block_b, _round_up(max(B, 1), 16))
    if B > 256 and _round_up(B, TB) // TB < 2:
        TB = _round_up(pl.cdiv(B, 2), 16)
    B_pad = _round_up(max(B, 1), TB)
    num_tiles = B_pad // TB

    x_in = x if B_pad == B else jnp.pad(x, ((0, B_pad - B), (0, 0)))

    # Advisory cost: real (post-optimization) flops / bytes, not padded-to-128.
    cost = pl.CostEstimate(
        flops=2 * B_pad * (n_in * H + H * n_out),
        transcendentals=0,
        bytes_accessed=(x_in.size * x_in.dtype.itemsize
                        + w1_p.size * 2 + w2_p.size * 2
                        + b1_p.size * 4 + b2_p.size * 4
                        + B_pad * n_out * 4),
    )

    out_padded = pl.pallas_call(
        dqn_kernel,
        out_shape=jax.ShapeDtypeStruct((B_pad, n_out), jnp.float32),
        grid=(num_tiles,),
        in_specs=[
            # x: tiled over the batch axis; last dim equals the full array dim
            # (legal BlockSpec) so no contraction-dim padding is read.
            pl.BlockSpec((TB, n_in), lambda i: (i, 0)),
            # Weights / biases: constant index_map -> VMEM-resident across the
            # grid; single-buffered since they never change between steps.
            pl.BlockSpec((n_in, H), lambda i: (0, 0),
                         pipeline_mode=pl.Buffered(1)),
            pl.BlockSpec((1, H), lambda i: (0, 0),
                         pipeline_mode=pl.Buffered(1)),
            pl.BlockSpec((H, n_out), lambda i: (0, 0),
                         pipeline_mode=pl.Buffered(1)),
            pl.BlockSpec((1, n_out), lambda i: (0, 0),
                         pipeline_mode=pl.Buffered(1)),
        ],
        # Narrow (n_out-wide) output: accepts masked stores in exchange for a
        # 32x reduction in HBM write bytes for the mem-bound regime.
        out_specs=pl.BlockSpec((TB, n_out), lambda i: (i, 0)),
        compiler_params=pltpu.CompilerParams(
            # Batch tiles are independent -> megacore sharding on v7x.
            dimension_semantics=("parallel",),
        ),
        cost_estimate=cost,
    )(x_in, w1_p, b1_p, w2_p, b2_p)

    return out_padded if B_pad == B else out_padded[:B]


def init_dqn_params(key, n_input, n_hidden, n_output, dtype=jnp.float32):
    """Xavier-normal weights (nn.init.xavier_normal_) and zero biases
    (nn.init.constant_(bias, 0)). Weights stored as [in, out] so y = x @ W."""
    k1, k2 = jax.random.split(key)
    std1 = (2.0 / (n_input + n_hidden)) ** 0.5
    std2 = (2.0 / (n_hidden + n_output)) ** 0.5
    w1 = (jax.random.normal(k1, (n_input, n_hidden), jnp.float32) * std1).astype(dtype)
    b1 = jnp.zeros((1, n_hidden), dtype)
    w2 = (jax.random.normal(k2, (n_hidden, n_output), jnp.float32) * std2).astype(dtype)
    b2 = jnp.zeros((1, n_output), dtype)
    return w1, b1, w2, b2


if __name__ == "__main__":
    # Small shapes consistent with the maze DQN module.
    n_input, n_hidden, n_output = 16, 32, 4
    batch = 8

    key = jax.random.PRNGKey(0)
    kx, kp = jax.random.split(key)

    x = jax.random.normal(kx, (batch, n_input), jnp.float32)
    w1, b1, w2, b2 = init_dqn_params(kp, n_input, n_hidden, n_output)

    # Pad / cast parameters once (out of the per-step hot path).
    params = prepare_dqn_params(w1, b1, w2, b2)

    out = dqn_forward(x, params)
    out = jax.block_until_ready(out)

    # Plain-JAX f32 reference (same math as the PyTorch module forward).
    ref = jnp.maximum(x @ w1 + b1, 0.0) @ w2 + b2
    assert out.shape == (batch, n_output)
    # Loose tolerance: kernel feeds the MXU bf16 operands (f32 accumulation).
    assert jnp.allclose(out, ref, atol=5e-2, rtol=5e-2), (
        float(jnp.max(jnp.abs(out - ref))))

    print("KERNEL_OK")
</pallas_src>

<mosaic_0001>
module attributes {stable_mosaic.version = 11 : i64} {
  func.func @dqn_kernel(%arg0: i32, %arg1: memref<16x16xf32, #tpu.memory_space<vmem>>, %arg2: memref<16x128xbf16, #tpu.memory_space<vmem>>, %arg3: memref<1x128xf32, #tpu.memory_space<vmem>>, %arg4: memref<128x4xbf16, #tpu.memory_space<vmem>>, %arg5: memref<1x4xf32, #tpu.memory_space<vmem>>, %arg6: memref<16x4xf32, #tpu.memory_space<vmem>>) attributes {dimension_semantics = [#tpu.dimension_semantics<parallel>], iteration_bounds = array<i64: 1>, scalar_prefetch = 0 : i64, scratch_operands = 0 : i64, tpu.core_type = #tpu.core_type<tc>, window_params = [{transform_indices = @transform_0, window_bounds = array<i64: 16, 16>}, {pipeline_mode = #tpu.pipeline_mode<synchronous>, transform_indices = @transform_1, window_bounds = array<i64: 16, 128>}, {pipeline_mode = #tpu.pipeline_mode<synchronous>, transform_indices = @transform_2, window_bounds = array<i64: 1, 128>}, {pipeline_mode = #tpu.pipeline_mode<synchronous>, transform_indices = @transform_3, window_bounds = array<i64: 128, 4>}, {pipeline_mode = #tpu.pipeline_mode<synchronous>, transform_indices = @transform_4, window_bounds = array<i64: 1, 4>}, {transform_indices = @transform_5, window_bounds = array<i64: 16, 4>}]} {
    %c0 = arith.constant 0 : index
    %c0_0 = arith.constant 0 : index
    %0 = vector.load %arg1[%c0, %c0_0] : memref<16x16xf32, #tpu.memory_space<vmem>>, vector<16x16xf32>
    %1 = arith.truncf %0 : vector<16x16xf32> to vector<16x16xbf16>
    %c0_1 = arith.constant 0 : index
    %c0_2 = arith.constant 0 : index
    %2 = vector.load %arg2[%c0_1, %c0_2] : memref<16x128xbf16, #tpu.memory_space<vmem>>, vector<16x128xbf16>
    %cst = arith.constant dense<0.000000e+00> : vector<16x128xf32>
    %3 = tpu.matmul %1, %2, %cst {dimension_numbers = #tpu.dot_dimension_numbers<[1], [0], [0], [1], [0, 0, 1, 1], [], []>} : vector<16x16xbf16>, vector<16x128xbf16>, vector<16x128xf32> -> vector<16x128xf32>
    %c0_3 = arith.constant 0 : index
    %c0_4 = arith.constant 0 : index
    %4 = vector.load %arg3[%c0_3, %c0_4] : memref<1x128xf32, #tpu.memory_space<vmem>>, vector<1x128xf32>
    %5 = vector.broadcast %4 : vector<1x128xf32> to vector<16x128xf32>
    %6 = arith.addf %3, %5 : vector<16x128xf32>
    %cst_5 = arith.constant 0.000000e+00 : f32
    %7 = vector.broadcast %cst_5 : f32 to vector<16x128xf32>
    %8 = arith.maximumf %6, %7 : vector<16x128xf32>
    %9 = arith.truncf %8 : vector<16x128xf32> to vector<16x128xbf16>
    %c0_6 = arith.constant 0 : index
    %c0_7 = arith.constant 0 : index
    %10 = vector.load %arg4[%c0_6, %c0_7] : memref<128x4xbf16, #tpu.memory_space<vmem>>, vector<128x4xbf16>
    %cst_8 = arith.constant dense<0.000000e+00> : vector<16x4xf32>
    %11 = tpu.matmul %9, %10, %cst_8 {dimension_numbers = #tpu.dot_dimension_numbers<[1], [0], [0], [1], [0, 0, 1, 1], [], []>} : vector<16x128xbf16>, vector<128x4xbf16>, vector<16x4xf32> -> vector<16x4xf32>
    %c0_9 = arith.constant 0 : index
    %c0_10 = arith.constant 0 : index
    %12 = vector.load %arg5[%c0_9, %c0_10] : memref<1x4xf32, #tpu.memory_space<vmem>>, vector<1x4xf32>
    %13 = vector.broadcast %12 : vector<1x4xf32> to vector<16x4xf32>
    %14 = arith.addf %11, %13 : vector<16x4xf32>
    %c0_11 = arith.constant 0 : index
    %c0_12 = arith.constant 0 : index
    %15 = vector.load %arg6[%c0_11, %c0_12] : memref<16x4xf32, #tpu.memory_space<vmem>>, vector<16x4xf32>
    tpu.vector_store %arg6[%c0_11, %c0_12], %14 {strides = array<i32>} : memref<16x4xf32, #tpu.memory_space<vmem>>, vector<16x4xf32>,
    return
  }
  func.func @transform_0(%arg0: i32) -> (i32, i32) {
    %c0_i32 = arith.constant 0 : i32
    %c0_i32_0 = arith.constant 0 : i32
    return %arg0, %c0_i32 : i32, i32
  }
  func.func @transform_1(%arg0: i32) -> (i32, i32) {
    %c0_i32 = arith.constant 0 : i32
    %c0_i32_0 = arith.constant 0 : i32
    %c0_i32_1 = arith.constant 0 : i32
    return %c0_i32, %c0_i32_0 : i32, i32
  }
  func.func @transform_2(%arg0: i32) -> (i32, i32) {
    %c0_i32 = arith.constant 0 : i32
    %c0_i32_0 = arith.constant 0 : i32
    %c0_i32_1 = arith.constant 0 : i32
    return %c0_i32, %c0_i32_0 : i32, i32
  }
  func.func @transform_3(%arg0: i32) -> (i32, i32) {
    %c0_i32 = arith.constant 0 : i32
    %c0_i32_0 = arith.constant 0 : i32
    %c0_i32_1 = arith.constant 0 : i32
    return %c0_i32, %c0_i32_0 : i32, i32
  }
  func.func @transform_4(%arg0: i32) -> (i32, i32) {
    %c0_i32 = arith.constant 0 : i32
    %c0_i32_0 = arith.constant 0 : i32
    %c0_i32_1 = arith.constant 0 : i32
    return %c0_i32, %c0_i32_0 : i32, i32
  }
  func.func @transform_5(%arg0: i32) -> (i32, i32) {
    %c0_i32 = arith.constant 0 : i32
    %c0_i32_0 = arith.constant 0 : i32
    return %arg0, %c0_i32 : i32, i32
  }
}

</mosaic_0001>

<bundles_post_ra>
// kernel: dqn_forward.1
= control target key start
LH: loop header
LB: loop body
LE: loop exit
PB: predicated region body
PF: predicated region fallthrough
CT: control target
= control target key end

     0   :  { %v266_v0 = vmov 0.0   ;;  %vm267_vm0 = vmmov 0   ;;  %vm39_vm1 = vcmask 130048   ;;  %vm199_vm2 = vcmask 31744   ;;  %s343_s1 = inlined_call_operand.vmem [shape: bf16[16,128], index: 1, kind: input, shape index: {}]   ;;  %s344_s0 = inlined_call_operand.vmem [shape: f32[16,16], index: 0, kind: input, shape index: {}]   ;;  %s345_s3 = inlined_call_operand.vmem [shape: bf16[128,4], index: 3, kind: input, shape index: {}]   ;;  %s346_s2 = inlined_call_operand.vmem [shape: f32[1,128], index: 2, kind: input, shape index: {}]   ;;  %s347_s4 = inlined_call_operand.vmem [shape: f32[1,4], index: 4, kind: input, shape index: {}]   ;;  %s348_s5 = inlined_call_operand.vmem [shape: f32[16,4], index: 5, kind: output, shape index: {}]  }
   0x1   :  { %229 = vmatprep.subr.bf16.mxu0 %v266_v0  ;;  %v257_v1 = vld [vmem:[%s343_s1] sm:$0xff]   ;;  %231 = vmatprep.mubr.msk.bf16.mxu0 %vm267_vm0, %v266_v0  ;;  %v22_v3 = vld [vmem:[%s344_s0 + $0x8] sm:$0xff]  ;;  %v260_v7 = vld [vmem:[%s345_s3 + $0x10] sm:$0xff]  }
   0x2   :  { %v21_v2 = vld [vmem:[%s344_s0] sm:$0xff]  ;;  %235 = vmatprep.subr.bf16.mxu1 %v266_v0  ;;  %251 = vmatprep.mubr.msk.bf16.mxu1 %vm267_vm0, %v266_v0  ;;  %v259_v6 = vld [vmem:[%s345_s3 + $0x8] sm:$0xff]   ;;  %v261_v8 = vld [vmem:[%s345_s3 + $0x18] sm:$0xff]  }
   0x3   :  { %230 = vmatpush3.bf16.msra.mxu0 %v257_v1  ;;  %v23_v4 = vpack.c.bf16 %v22_v3, %v21_v2  ;;  %v258_v5 = vld [vmem:[%s345_s3] sm:$0xff]   ;;  %v263_v10 = vld [vmem:[%s345_s3 + $0x28] sm:$0xff]   ;;  %v264_v11 = vld [vmem:[%s345_s3 + $0x30] sm:$0xff]  }
   0x4   :  { %236 = vmatpush3.bf16.msra.mxu1 %v258_v5  ;;  %v262_v9 = vld [vmem:[%s345_s3 + $0x20] sm:$0xff]   ;;  %v265_v12 = vld [vmem:[%s345_s3 + $0x38] sm:$0xff]  }
   0x5   :  { %237 = vmatprep.subr.bf16.mxu1 %v266_v0  ;;  %v206_v13 = vld [vmem:[%s346_s2] ss:$0 sm:$0xff] }
   0x6   :  { %232 = vmatmul.mubr.msk.bf16.vlgmr.msra.gmra.mrb[0].mxu0 %vm39_vm1, %v23_v4  ;;  %v209_v23 = vld [vmem:[%s347_s4] ss:$0 sm:$0xff] }
   0x8   :  { %238 = vmatpush3.bf16.msra.mxu1 %v259_v6 }
   0x9   :  { %239 = vmatprep.subr.bf16.mxu1 %v266_v0 }
   0xc   :  { %240 = vmatpush3.bf16.msra.mxu1 %v260_v7 }
   0xd   :  { %241 = vmatprep.subr.bf16.mxu1 %v266_v0 }
  0x10   :  { %242 = vmatpush3.bf16.msra.mxu1 %v261_v8 }
  0x11   :  { %243 = vmatprep.subr.bf16.mxu1 %v266_v0 }
  0x14   :  { %244 = vmatpush3.bf16.msra.mxu1 %v262_v9 }
  0x15   :  { %245 = vmatprep.subr.bf16.mxu1 %v266_v0 }
  0x18   :  { %246 = vmatpush3.bf16.msra.mxu1 %v263_v10 }
  0x19   :  { %247 = vmatprep.subr.bf16.mxu1 %v266_v0 }
  0x1c   :  { %248 = vmatpush3.bf16.msra.mxu1 %v264_v11 }
  0x1d   :  { %249 = vmatprep.subr.bf16.mxu1 %v266_v0 }
  0x20   :  { %250 = vmatpush3.bf16.msra.mxu1 %v265_v12 }
  0xd9   :  { %v77_v14 = vpop.f32.mrb[0].mxu0 }
  0xda   :  { %v78_v15 = vadd.f32 %v206_v13, %v77_v14  ;;  %v233_v16 = vpop.f32.mrb[1].mxu0 }
  0xdb   :  { %v80_v17 = vpop.f32.mrb[2].mxu0 }
  0xdc   :  { %v81_v18 = vadd.f32 %v206_v13, %v80_v17  ;;  %v234_v19 = vpop.f32.mrb[3].mxu0  ;;  %v84_v20 = vmax.f32 %v78_v15, 0.0 }
  0xde   :  { %v85_v21 = vmax.f32 %v81_v18, 0.0 }
  0xe0   :  { %v86_v22 = vpack.c.bf16 %v85_v21, %v84_v20 }
  0xe2   :  { %252 = vmatmul.mubr.bf16.vlgmr.msra.gmra.mrb[0].mxu1 %v86_v22 }
 0x1b5   :  { %v192_v24 = vpop.f32.mrb[0].mxu1 }
 0x1b6   :  { %v193_v25 = vadd.f32 %v209_v23, %v192_v24  ;;  %v253_v26 = vpop.f32.mrb[1].mxu1 }
 0x1b7   :  { %v195_v27 = vpop.f32.mrb[2].mxu1 }
 0x1b8   :  { %200 = vst.msk [vmem:[%s348_s5] sm:$0xff] %vm199_vm2, %v193_v25  ;;  %v196_v28 = vadd.f32 %v209_v23, %v195_v27  ;;  %v254_v29 = vpop.f32.mrb[3].mxu1 }
 0x1ba   :  { %201 = vst.msk [vmem:[%s348_s5 + $0x8] sm:$0xff] %vm199_vm2, %v196_v28 }

</bundles_post_ra>
